<compile_context>
chip_gen: v7x
topology: tpu7x:2x2x1
jax: 0.10.0
libtpu: 0.0.40
codegen_flags: <defaults>
</compile_context>

<pallas_src>
import functools

import jax
import jax.numpy as jnp
import numpy as np
from jax.experimental import pallas as pl
from jax.experimental.pallas import tpu as pltpu


def _round_up(x, m):
    return (x + m - 1) // m * m


def _conv_gn_relu_kernel(x_ref, w_ref, params_ref, gmat_ref, mask_ref, out_ref,
                         *, k, wp, eps):
    """Fused Conv2d + GroupNorm + ReLU for one batch element.

    x_ref      : (1, C_in, Sp)        bf16  zero-padded sample, spatial flattened
    w_ref      : (C_out, k*k*C_in)    bf16  weights, lane block t*C_in:(t+1)*C_in is tap t=dy*k+dx
    params_ref : (C_out, 3)           f32   packed [bias | gamma | beta]
    gmat_ref   : (C_out, C_out)       f32   group membership / (cg*H*W)
    mask_ref   : (1, L_out)           f32   1.0 at valid flattened output positions
    out_ref    : (1, C_out, L_out)    f32
    """
    l_out = out_ref.shape[-1]
    c_in = x_ref.shape[1]

    x = x_ref[0]                         # (C_in, Sp) bf16, lives in vregs for all taps
    wfull = w_ref[...]                   # (C_out, k*k*C_in) bf16
    c_out = wfull.shape[0]

    # Shift-and-accumulate conv: k*k small bf16 MXU matmuls into an f32 accumulator.
    acc = jnp.zeros((c_out, l_out), jnp.float32)
    for t in range(k * k):
        off = (t // k) * wp + (t % k)    # tap (dy, dx) -> flat spatial shift dy*Wp + dx
        xt = x[:, off:off + l_out]                       # (C_in, L_out)  static lane slice
        wt = wfull[:, t * c_in:(t + 1) * c_in]           # (C_out, C_in)
        acc = acc + jnp.dot(wt, xt, preferred_element_type=jnp.float32)

    p = params_ref[...]                                  # (C_out, 3)
    bias, gamma, beta = p[:, 0:1], p[:, 1:2], p[:, 2:3]
    y = acc + bias                                       # (C_out, L_out) f32

    # GroupNorm(num_groups=4): one-pass stats over VALID positions only, single fused
    # group matmul on [sum | sum of squares]; gmat is pre-divided by cg*H*W.
    m = mask_ref[...]                                    # (1, L_out)
    ym = y * m
    ch_sum = jnp.sum(ym, axis=1, keepdims=True)          # (C_out, 1)
    ch_sq = jnp.sum(ym * y, axis=1, keepdims=True)       # (C_out, 1) = sum(mask * y^2)
    stats = jnp.concatenate([ch_sum, ch_sq], axis=1)     # (C_out, 2)
    mv = jnp.dot(gmat_ref[...], stats, preferred_element_type=jnp.float32)
    mean, ex2 = mv[:, 0:1], mv[:, 1:2]
    var = ex2 - mean * mean
    inv = jax.lax.rsqrt(var + eps)
    scale = inv * gamma                                  # fold affine weight into inv-std
    shift = beta - mean * scale
    out_ref[0] = jnp.maximum(y * scale + shift, 0.0)     # ReLU; invalid cols cropped outside


def conv_gn_relu(x, w, b, gamma, beta, *, k, num_groups=4, eps=1e-5):
    """One DenseTFCC layer: Conv2d(c_in->c_out, k, pad=k//2) + GroupNorm(4, c) + ReLU."""
    n, c_in, h, wd = x.shape
    c_out = w.shape[0]
    assert w.shape == (c_out, c_in, k, k)
    assert c_out % num_groups == 0
    p = k // 2
    hp, wp = h + 2 * p, wd + 2 * p

    # Flattened padded-spatial trick: output position s = row*Wp + col; tap (dy, dx) is
    # the flat input slice starting at dy*Wp + dx.  L_out is rounded up to a multiple of
    # 128 so the kernel output is lane-dense; the extra columns (width padding / tail)
    # are masked out of the GroupNorm stats and cropped below.
    l_out = _round_up(h * wp, 128)
    max_off = (k - 1) * wp + (k - 1)
    sp = max_off + l_out                                 # flat length every tap slice needs

    # --- glue (plain JAX): pad + flatten + parameter packing, all tiny vs. old im2col ---
    x_bf = x.astype(jnp.bfloat16)                        # bf16 MXU operand (halves HBM bytes)
    x_pad = jnp.pad(x_bf, ((0, 0), (0, 0), (p, p), (p, p)))        # (N, C_in, Hp, Wp)
    x_flat = x_pad.reshape(n, c_in, hp * wp)
    x_flat = jnp.pad(x_flat, ((0, 0), (0, 0), (0, sp - hp * wp)))  # zero tail -> (N, C_in, Sp)

    # Weights: (C_out, k*k*C_in), tap-major lanes so tap t is lanes [t*C_in, (t+1)*C_in).
    w2 = jnp.transpose(w, (0, 2, 3, 1)).reshape(c_out, k * k * c_in).astype(jnp.bfloat16)

    # Packed per-channel params: [bias | gamma | beta]  -> one small input, one DMA.
    params = jnp.stack([b, gamma, beta], axis=1).astype(jnp.float32)   # (C_out, 3)

    # Group-membership matrix pre-divided by the per-group element count.
    cg = c_out // num_groups
    gidx = np.arange(c_out) // cg
    gmat = (gidx[:, None] == gidx[None, :]).astype(np.float32) / float(cg * h * wd)
    gmat = jnp.asarray(gmat)                                           # (C_out, C_out)

    # Validity mask over the flattened padded spatial axis.
    s = np.arange(l_out)
    mask = (((s % wp) < wd) & (s < h * wp)).astype(np.float32)[None, :]
    mask = jnp.asarray(mask)                                           # (1, L_out)

    kern = functools.partial(_conv_gn_relu_kernel, k=k, wp=wp, eps=eps)
    out_flat = pl.pallas_call(
        kern,
        out_shape=jax.ShapeDtypeStruct((n, c_out, l_out), jnp.float32),
        grid_spec=pltpu.PrefetchScalarGridSpec(
            num_scalar_prefetch=0,
            grid=(n,),
            in_specs=[
                pl.BlockSpec((1, c_in, sp), lambda i: (i, 0, 0)),
                pl.BlockSpec((c_out, k * k * c_in), lambda i: (0, 0)),
                pl.BlockSpec((c_out, 3), lambda i: (0, 0)),
                pl.BlockSpec((c_out, c_out), lambda i: (0, 0)),
                pl.BlockSpec((1, l_out), lambda i: (0, 0)),
            ],
            out_specs=pl.BlockSpec((1, c_out, l_out), lambda i: (i, 0, 0)),
        ),
        compiler_params=pltpu.CompilerParams(
            dimension_semantics=("parallel",)),
    )(x_flat, w2, params, gmat, mask)

    # Crop the flattened padded spatial axis back to (H, W); output stays NCHW.
    out = out_flat[:, :, :h * wp].reshape(n, c_out, h, wp)[:, :, :, :wd]
    return out


def dense_tfcc_forward(x, params, k):
    """Mirrors DenseTFCC.forward: dense concat for all layers but the last."""
    for (w, b, gamma, beta) in params[:-1]:
        y = conv_gn_relu(x, w, b, gamma, beta, k=k)
        x = jnp.concatenate([y, x], axis=1)   # torch.cat([...], dim=1) equivalent (glue)
    w, b, gamma, beta = params[-1]
    return conv_gn_relu(x, w, b, gamma, beta, k=k)


def init_dense_tfcc(key, c, l, k):
    """Deterministic parameter init (synthetic; matches module shapes)."""
    params = []
    for _ in range(l):
        key, kw, kb = jax.random.split(key, 3)
        w = jax.random.normal(kw, (c, c, k, k), jnp.float32) / np.sqrt(c * k * k)
        b = 0.1 * jax.random.normal(kb, (c,), jnp.float32)
        gamma = jnp.ones((c,), jnp.float32)   # GroupNorm affine init: weight=1
        beta = jnp.zeros((c,), jnp.float32)   # GroupNorm affine init: bias=0
        params.append((w, b, gamma, beta))
    return params


def _ref_layer(x, w, b, gamma, beta, k, num_groups=4, eps=1e-5):
    """Pure-JAX reference for one layer (conv + GroupNorm + ReLU)."""
    y = jax.lax.conv_general_dilated(
        x, w, (1, 1), [(k // 2, k // 2)] * 2,
        dimension_numbers=("NCHW", "OIHW", "NCHW"),
        precision=jax.lax.Precision.HIGHEST)
    y = y + b.reshape(1, -1, 1, 1)
    n, c, h, wd = y.shape
    yg = y.reshape(n, num_groups, (c // num_groups) * h * wd)
    m = yg.mean(-1, keepdims=True)
    v = ((yg - m) ** 2).mean(-1, keepdims=True)
    yn = ((yg - m) / jnp.sqrt(v + eps)).reshape(n, c, h, wd)
    return jnp.maximum(yn * gamma.reshape(1, -1, 1, 1) + beta.reshape(1, -1, 1, 1), 0.0)


def _ref_forward(x, params, k):
    for (w, b, g, bt) in params[:-1]:
        x = jnp.concatenate([_ref_layer(x, w, b, g, bt, k), x], axis=1)
    w, b, g, bt = params[-1]
    return _ref_layer(x, w, b, g, bt, k)


if __name__ == "__main__":
    key = jax.random.PRNGKey(0)
    c, l, k = 4, 1, 3            # l=1: only shape-consistent DenseTFCC config
    n, h, wd = 2, 16, 16

    key, kx = jax.random.split(key)
    x = jax.random.normal(kx, (n, c, h, wd), jnp.float32)
    params = init_dense_tfcc(key, c, l, k)

    # The kernel feeds the MXU bf16 operands; pre-round the conv operands to bf16 for
    # BOTH paths so the f32 HIGHEST reference isolates accumulation / GroupNorm error
    # from operand quantization (per the review's correctness note).
    x = x.astype(jnp.bfloat16).astype(jnp.float32)
    params = [(w.astype(jnp.bfloat16).astype(jnp.float32), b, g, bt)
              for (w, b, g, bt) in params]

    out = jax.block_until_ready(dense_tfcc_forward(x, params, k))
    ref = jax.block_until_ready(_ref_forward(x, params, k))
    assert out.shape == ref.shape == (n, c, h, wd)
    np.testing.assert_allclose(np.asarray(out), np.asarray(ref), rtol=2e-3, atol=2e-3)

    print("KERNEL_OK")
</pallas_src>

<mosaic_0001>
module attributes {stable_mosaic.version = 11 : i64} {
  func.func @_conv_gn_relu_kernel(%arg0: i32, %arg1: memref<1x4x422xbf16, #tpu.memory_space<vmem>>, %arg2: memref<4x36xbf16, #tpu.memory_space<vmem>>, %arg3: memref<4x3xf32, #tpu.memory_space<vmem>>, %arg4: memref<4x4xf32, #tpu.memory_space<vmem>>, %arg5: memref<1x384xf32, #tpu.memory_space<vmem>>, %arg6: memref<1x4x384xf32, #tpu.memory_space<vmem>>) attributes {dimension_semantics = [#tpu.dimension_semantics<parallel>], iteration_bounds = array<i64: 2>, scalar_prefetch = 0 : i64, scratch_operands = 0 : i64, tpu.core_type = #tpu.core_type<tc>, window_params = [{transform_indices = @transform_0, window_bounds = array<i64: 1, 4, 422>}, {pipeline_mode = #tpu.pipeline_mode<synchronous>, transform_indices = @transform_1, window_bounds = array<i64: 4, 36>}, {pipeline_mode = #tpu.pipeline_mode<synchronous>, transform_indices = @transform_2, window_bounds = array<i64: 4, 3>}, {pipeline_mode = #tpu.pipeline_mode<synchronous>, transform_indices = @transform_3, window_bounds = array<i64: 4, 4>}, {pipeline_mode = #tpu.pipeline_mode<synchronous>, transform_indices = @transform_4, window_bounds = array<i64: 1, 384>}, {transform_indices = @transform_5, window_bounds = array<i64: 1, 4, 384>}]} {
    %c0 = arith.constant 0 : index
    %c0_0 = arith.constant 0 : index
    %c0_1 = arith.constant 0 : index
    %0 = vector.load %arg1[%c0, %c0_0, %c0_1] : memref<1x4x422xbf16, #tpu.memory_space<vmem>>, vector<1x4x422xbf16>
    %1 = vector.shape_cast %0 : vector<1x4x422xbf16> to vector<4x422xbf16>
    %c0_2 = arith.constant 0 : index
    %c0_3 = arith.constant 0 : index
    %2 = vector.load %arg2[%c0_2, %c0_3] : memref<4x36xbf16, #tpu.memory_space<vmem>>, vector<4x36xbf16>
    %cst = arith.constant 0.000000e+00 : f32
    %3 = vector.broadcast %cst : f32 to vector<4x384xf32>
    %4 = vector.extract_strided_slice %1 {offsets = [0, 0], sizes = [4, 384], strides = [1, 1]} : vector<4x422xbf16> to vector<4x384xbf16>
    %5 = vector.extract_strided_slice %2 {offsets = [0, 0], sizes = [4, 4], strides = [1, 1]} : vector<4x36xbf16> to vector<4x4xbf16>
    %cst_4 = arith.constant dense<0.000000e+00> : vector<4x384xf32>
    %6 = tpu.matmul %5, %4, %cst_4 {dimension_numbers = #tpu.dot_dimension_numbers<[1], [0], [0], [1], [0, 0, 1, 1], [], []>} : vector<4x4xbf16>, vector<4x384xbf16>, vector<4x384xf32> -> vector<4x384xf32>
    %7 = arith.addf %3, %6 : vector<4x384xf32>
    %8 = vector.extract_strided_slice %1 {offsets = [0, 1], sizes = [4, 384], strides = [1, 1]} : vector<4x422xbf16> to vector<4x384xbf16>
    %9 = vector.extract_strided_slice %2 {offsets = [0, 4], sizes = [4, 4], strides = [1, 1]} : vector<4x36xbf16> to vector<4x4xbf16>
    %cst_5 = arith.constant dense<0.000000e+00> : vector<4x384xf32>
    %10 = tpu.matmul %9, %8, %cst_5 {dimension_numbers = #tpu.dot_dimension_numbers<[1], [0], [0], [1], [0, 0, 1, 1], [], []>} : vector<4x4xbf16>, vector<4x384xbf16>, vector<4x384xf32> -> vector<4x384xf32>
    %11 = arith.addf %7, %10 : vector<4x384xf32>
    %12 = vector.extract_strided_slice %1 {offsets = [0, 2], sizes = [4, 384], strides = [1, 1]} : vector<4x422xbf16> to vector<4x384xbf16>
    %13 = vector.extract_strided_slice %2 {offsets = [0, 8], sizes = [4, 4], strides = [1, 1]} : vector<4x36xbf16> to vector<4x4xbf16>
    %cst_6 = arith.constant dense<0.000000e+00> : vector<4x384xf32>
    %14 = tpu.matmul %13, %12, %cst_6 {dimension_numbers = #tpu.dot_dimension_numbers<[1], [0], [0], [1], [0, 0, 1, 1], [], []>} : vector<4x4xbf16>, vector<4x384xbf16>, vector<4x384xf32> -> vector<4x384xf32>
    %15 = arith.addf %11, %14 : vector<4x384xf32>
    %16 = vector.extract_strided_slice %1 {offsets = [0, 18], sizes = [4, 384], strides = [1, 1]} : vector<4x422xbf16> to vector<4x384xbf16>
    %17 = vector.extract_strided_slice %2 {offsets = [0, 12], sizes = [4, 4], strides = [1, 1]} : vector<4x36xbf16> to vector<4x4xbf16>
    %cst_7 = arith.constant dense<0.000000e+00> : vector<4x384xf32>
    %18 = tpu.matmul %17, %16, %cst_7 {dimension_numbers = #tpu.dot_dimension_numbers<[1], [0], [0], [1], [0, 0, 1, 1], [], []>} : vector<4x4xbf16>, vector<4x384xbf16>, vector<4x384xf32> -> vector<4x384xf32>
    %19 = arith.addf %15, %18 : vector<4x384xf32>
    %20 = vector.extract_strided_slice %1 {offsets = [0, 19], sizes = [4, 384], strides = [1, 1]} : vector<4x422xbf16> to vector<4x384xbf16>
    %21 = vector.extract_strided_slice %2 {offsets = [0, 16], sizes = [4, 4], strides = [1, 1]} : vector<4x36xbf16> to vector<4x4xbf16>
    %cst_8 = arith.constant dense<0.000000e+00> : vector<4x384xf32>
    %22 = tpu.matmul %21, %20, %cst_8 {dimension_numbers = #tpu.dot_dimension_numbers<[1], [0], [0], [1], [0, 0, 1, 1], [], []>} : vector<4x4xbf16>, vector<4x384xbf16>, vector<4x384xf32> -> vector<4x384xf32>
    %23 = arith.addf %19, %22 : vector<4x384xf32>
    %24 = vector.extract_strided_slice %1 {offsets = [0, 20], sizes = [4, 384], strides = [1, 1]} : vector<4x422xbf16> to vector<4x384xbf16>
    %25 = vector.extract_strided_slice %2 {offsets = [0, 20], sizes = [4, 4], strides = [1, 1]} : vector<4x36xbf16> to vector<4x4xbf16>
    %cst_9 = arith.constant dense<0.000000e+00> : vector<4x384xf32>
    %26 = tpu.matmul %25, %24, %cst_9 {dimension_numbers = #tpu.dot_dimension_numbers<[1], [0], [0], [1], [0, 0, 1, 1], [], []>} : vector<4x4xbf16>, vector<4x384xbf16>, vector<4x384xf32> -> vector<4x384xf32>
    %27 = arith.addf %23, %26 : vector<4x384xf32>
    %28 = vector.extract_strided_slice %1 {offsets = [0, 36], sizes = [4, 384], strides = [1, 1]} : vector<4x422xbf16> to vector<4x384xbf16>
    %29 = vector.extract_strided_slice %2 {offsets = [0, 24], sizes = [4, 4], strides = [1, 1]} : vector<4x36xbf16> to vector<4x4xbf16>
    %cst_10 = arith.constant dense<0.000000e+00> : vector<4x384xf32>
    %30 = tpu.matmul %29, %28, %cst_10 {dimension_numbers = #tpu.dot_dimension_numbers<[1], [0], [0], [1], [0, 0, 1, 1], [], []>} : vector<4x4xbf16>, vector<4x384xbf16>, vector<4x384xf32> -> vector<4x384xf32>
    %31 = arith.addf %27, %30 : vector<4x384xf32>
    %32 = vector.extract_strided_slice %1 {offsets = [0, 37], sizes = [4, 384], strides = [1, 1]} : vector<4x422xbf16> to vector<4x384xbf16>
    %33 = vector.extract_strided_slice %2 {offsets = [0, 28], sizes = [4, 4], strides = [1, 1]} : vector<4x36xbf16> to vector<4x4xbf16>
    %cst_11 = arith.constant dense<0.000000e+00> : vector<4x384xf32>
    %34 = tpu.matmul %33, %32, %cst_11 {dimension_numbers = #tpu.dot_dimension_numbers<[1], [0], [0], [1], [0, 0, 1, 1], [], []>} : vector<4x4xbf16>, vector<4x384xbf16>, vector<4x384xf32> -> vector<4x384xf32>
    %35 = arith.addf %31, %34 : vector<4x384xf32>
    %36 = vector.extract_strided_slice %1 {offsets = [0, 38], sizes = [4, 384], strides = [1, 1]} : vector<4x422xbf16> to vector<4x384xbf16>
    %37 = vector.extract_strided_slice %2 {offsets = [0, 32], sizes = [4, 4], strides = [1, 1]} : vector<4x36xbf16> to vector<4x4xbf16>
    %cst_12 = arith.constant dense<0.000000e+00> : vector<4x384xf32>
    %38 = tpu.matmul %37, %36, %cst_12 {dimension_numbers = #tpu.dot_dimension_numbers<[1], [0], [0], [1], [0, 0, 1, 1], [], []>} : vector<4x4xbf16>, vector<4x384xbf16>, vector<4x384xf32> -> vector<4x384xf32>
    %39 = arith.addf %35, %38 : vector<4x384xf32>
    %c0_13 = arith.constant 0 : index
    %c0_14 = arith.constant 0 : index
    %40 = vector.load %arg3[%c0_13, %c0_14] : memref<4x3xf32, #tpu.memory_space<vmem>>, vector<4x3xf32>
    %41 = vector.extract_strided_slice %40 {offsets = [0, 0], sizes = [4, 1], strides = [1, 1]} : vector<4x3xf32> to vector<4x1xf32>
    %42 = vector.extract_strided_slice %40 {offsets = [0, 1], sizes = [4, 1], strides = [1, 1]} : vector<4x3xf32> to vector<4x1xf32>
    %43 = vector.extract_strided_slice %40 {offsets = [0, 2], sizes = [4, 1], strides = [1, 1]} : vector<4x3xf32> to vector<4x1xf32>
    %44 = vector.broadcast %41 : vector<4x1xf32> to vector<4x384xf32>
    %45 = arith.addf %39, %44 : vector<4x384xf32>
    %c0_15 = arith.constant 0 : index
    %c0_16 = arith.constant 0 : index
    %46 = vector.load %arg5[%c0_15, %c0_16] : memref<1x384xf32, #tpu.memory_space<vmem>>, vector<1x384xf32>
    %47 = vector.broadcast %46 : vector<1x384xf32> to vector<4x384xf32>
    %48 = arith.mulf %45, %47 : vector<4x384xf32>
    %cst_17 = arith.constant dense<0.000000e+00> : vector<4xf32>
    %49 = vector.multi_reduction <add>, %48, %cst_17 [1] : vector<4x384xf32> to vector<4xf32>
    %50 = vector.shape_cast %49 : vector<4xf32> to vector<4x1xf32>
    %51 = arith.mulf %48, %45 : vector<4x384xf32>
    %cst_18 = arith.constant dense<0.000000e+00> : vector<4xf32>
    %52 = vector.multi_reduction <add>, %51, %cst_18 [1] : vector<4x384xf32> to vector<4xf32>
    %53 = vector.shape_cast %52 : vector<4xf32> to vector<4x1xf32>
    %54 = tpu.concatenate %50, %53 in 1 : vector<4x1xf32>, vector<4x1xf32> -> vector<4x2xf32>
    %c0_19 = arith.constant 0 : index
    %c0_20 = arith.constant 0 : index
    %55 = vector.load %arg4[%c0_19, %c0_20] : memref<4x4xf32, #tpu.memory_space<vmem>>, vector<4x4xf32>
    %cst_21 = arith.constant dense<0.000000e+00> : vector<4x2xf32>
    %56 = tpu.matmul %55, %54, %cst_21 {dimension_numbers = #tpu.dot_dimension_numbers<[1], [0], [0], [1], [0, 0, 1, 1], [], []>} : vector<4x4xf32>, vector<4x2xf32>, vector<4x2xf32> -> vector<4x2xf32>
    %57 = vector.extract_strided_slice %56 {offsets = [0, 0], sizes = [4, 1], strides = [1, 1]} : vector<4x2xf32> to vector<4x1xf32>
    %58 = vector.extract_strided_slice %56 {offsets = [0, 1], sizes = [4, 1], strides = [1, 1]} : vector<4x2xf32> to vector<4x1xf32>
    %59 = arith.mulf %57, %57 : vector<4x1xf32>
    %60 = arith.subf %58, %59 : vector<4x1xf32>
    %cst_22 = arith.constant 9.99999974E-6 : f32
    %61 = vector.broadcast %cst_22 : f32 to vector<4x1xf32>
    %62 = arith.addf %60, %61 : vector<4x1xf32>
    %63 = math.rsqrt %62 : vector<4x1xf32>
    %64 = arith.mulf %63, %42 : vector<4x1xf32>
    %65 = arith.mulf %57, %64 : vector<4x1xf32>
    %66 = arith.subf %43, %65 : vector<4x1xf32>
    %67 = vector.broadcast %64 : vector<4x1xf32> to vector<4x384xf32>
    %68 = arith.mulf %45, %67 : vector<4x384xf32>
    %69 = vector.broadcast %66 : vector<4x1xf32> to vector<4x384xf32>
    %70 = arith.addf %68, %69 : vector<4x384xf32>
    %cst_23 = arith.constant 0.000000e+00 : f32
    %71 = vector.broadcast %cst_23 : f32 to vector<4x384xf32>
    %72 = arith.maximumf %70, %71 : vector<4x384xf32>
    %c0_24 = arith.constant 0 : index
    %c0_25 = arith.constant 0 : index
    %c0_26 = arith.constant 0 : index
    %73 = vector.load %arg6[%c0_24, %c0_25, %c0_26] : memref<1x4x384xf32, #tpu.memory_space<vmem>>, vector<1x4x384xf32>
    %74 = vector.shape_cast %73 : vector<1x4x384xf32> to vector<4x384xf32>
    %75 = vector.shape_cast %72 : vector<4x384xf32> to vector<1x4x384xf32>
    tpu.vector_store %arg6[%c0_24, %c0_25, %c0_26], %75 {strides = array<i32>} : memref<1x4x384xf32, #tpu.memory_space<vmem>>, vector<1x4x384xf32>,
    return
  }
  func.func @transform_0(%arg0: i32) -> (i32, i32, i32) {
    %c0_i32 = arith.constant 0 : i32
    %c0_i32_0 = arith.constant 0 : i32
    %c0_i32_1 = arith.constant 0 : i32
    return %arg0, %c0_i32, %c0_i32_0 : i32, i32, i32
  }
  func.func @transform_1(%arg0: i32) -> (i32, i32) {
    %c0_i32 = arith.constant 0 : i32
    %c0_i32_0 = arith.constant 0 : i32
    %c0_i32_1 = arith.constant 0 : i32
    return %c0_i32, %c0_i32_0 : i32, i32
  }
  func.func @transform_2(%arg0: i32) -> (i32, i32) {
    %c0_i32 = arith.constant 0 : i32
    %c0_i32_0 = arith.constant 0 : i32
    %c0_i32_1 = arith.constant 0 : i32
    return %c0_i32, %c0_i32_0 : i32, i32
  }
  func.func @transform_3(%arg0: i32) -> (i32, i32) {
    %c0_i32 = arith.constant 0 : i32
    %c0_i32_0 = arith.constant 0 : i32
    %c0_i32_1 = arith.constant 0 : i32
    return %c0_i32, %c0_i32_0 : i32, i32
  }
  func.func @transform_4(%arg0: i32) -> (i32, i32) {
    %c0_i32 = arith.constant 0 : i32
    %c0_i32_0 = arith.constant 0 : i32
    %c0_i32_1 = arith.constant 0 : i32
    return %c0_i32, %c0_i32_0 : i32, i32
  }
  func.func @transform_5(%arg0: i32) -> (i32, i32, i32) {
    %c0_i32 = arith.constant 0 : i32
    %c0_i32_0 = arith.constant 0 : i32
    %c0_i32_1 = arith.constant 0 : i32
    return %arg0, %c0_i32, %c0_i32_0 : i32, i32, i32
  }
}

</mosaic_0001>

<bundles_post_ra>
// kernel: tpu_custom_call.1
= control target key start
LH: loop header
LB: loop body
LE: loop exit
PB: predicated region body
PF: predicated region fallthrough
CT: control target
= control target key end

     0   :  { %10 = vsyncpa [#allocation3], 0  ;;  %s2280_s0 = inlined_call_operand.hbm [shape: bf16[2,4,422], index: 0, kind: input, shape index: {}]   ;;  %s2281_s1 = inlined_call_operand.hbm [shape: bf16[4,36], index: 1, kind: input, shape index: {}]   ;;  %s2282_s2 = inlined_call_operand.vmem [shape: f32[4,3], index: 2, kind: input, shape index: {}]   ;;  %s2283_s3 = inlined_call_operand.vmem [shape: f32[4,4], index: 3, kind: input, shape index: {}]   ;;  %s2284_s4 = inlined_call_operand.vmem [shape: f32[1,384], index: 4, kind: input, shape index: {}]   ;;  %s2285_s5 = inlined_call_operand.hbm [shape: f32[2,4,384], index: 5, kind: output, shape index: {}]  }
   0x1   :  { %12 = vsyncpa [#allocation3 + $0x1], 0 }
   0x2   :  { %13 = vsyncpa [#allocation6], 0 }
   0x3   :  { %14 = vsyncpa [#allocation4], 0 }
   0x4   :  { %16 = vsyncpa [#allocation4 + $0x1], 0  ;;  %s1915_s18 = smov 0   ;;  %s1917_s19 = smov 0  }
   0x5   :  { %s1919_s20 = smov 0   ;;  %s1921_s21 = smov 0  }
   0x6 LB: > { %s1936_s22 = sadd.s32 4294967295, %s1857_s21   ;;  %s1519_s23 = sadd.s32 4294967294, %s1857_s21   ;;  %s1857_s21 = sphi %s1921_s21, %s2309_s21   ;;  %s1853_s20 = sphi %s1919_s20, %s2308_s20   ;;  %s1849_s19 = sphi %s1917_s19, %s2307_s19   ;;  %s1845_s18 = sphi %s1915_s18, %s2306_s18  }
   0x7   : > { %p42_p0 = scmp.ne.s32.totalorder %s1849_s19, %s1845_s18  ;;  %p2286_p1 = scmp.eq.s32.totalorder %s1936_s22, 0 }
   0x8   : > { %p156_p3 = scmp.eq.s32.totalorder %s1519_s23, 1  ;;  %p1520_p5 = scmp.ge.s32.totalorder %s1857_s21, 1 }
   0x9   : > { %p1945_p4 = por %p2286_p1, %p42_p0  ;;  %p163_p7 = scmp.lt.s32.totalorder %s1857_s21, 3 }
   0xa   : > { %p1950_p6 = por %p156_p3, %p42_p0  ;;  %s1859_s27 = smov [#allocation5]  }
   0xb   : > { %s2289_s24 = scalar_select %p1945_p4, 1, 0 }
   0xc   : > { %s2290_s25 = scalar_select %p1950_p6, 1, 0 }
   0xd   : > { %p1955_p8 = pnand %p1520_p5, %p163_p7  ;;  %s176_s28 = sshll.u32 %s1859_s27, 4  ;;  %s177_s28 = int_to_ptr.vmem [resolvable:$true] %s176_s28 }
   0xe   : > { %s1963_s29 = sadd.s32 1, %s1857_s21   ;;  %s29_s8 = sadd.s32 1, %s1853_s20 }
   0xf   : > { %s2291_s26 = scalar_select %p1955_p8, 1, 0 }
  0x10   : > { %p1651_p10 = pneg %p1955_p8  ;;  %s26_s6 = ssub.s32 %s1857_s21, %s1963_s29 }
  0x11   : > { %p1973_p12 = scmp.eq.s32.totalorder %s26_s6, 0  ;;  %s1729_s11 = scalar_lea.hbm %s2281_s1, 32 }
  0x12   : > { %p1967_p11 = pnand %p1651_p10, %p2286_p1  ;;  %p1730_p0 = scmp.ne.s32.totalorder %s2281_s1, %s1729_s11 }
  0x13   : > { %s2293_s7 = scalar_select %p1973_p12, 1, 0 }
  0x14   : > { %p1731_p3 = pneg %p1967_p11  ;;  %p1736_p10 = scmp.lt.u32.totalorder %s1729_s11, %s2281_s1 }
  0x16   : > { %p1732_p5 = pnand %p1731_p3, %p1730_p0 }
  0x18   : > { %p1733_p7 = pneg %p1732_p5 }
  0x1a   : > { %p1738_p9 = pnand %p1736_p10, %p1733_p7 }
  0x1c   : > { %1741 = shalt.err (!%p1738_p9)
}
  0x1d   : > { %s1742_s16 = scalar_lea.vmem %s177_s28, 32  ;;  %p1750_p6 = scmp.lt.s32.totalorder %s177_s28, %s177_s28 }
  0x1e   : > { %p1743_p1 = scmp.ne.s32.totalorder %s177_s28, %s1742_s16  ;;  %p1751_p4 = scmp.lt.s32.totalorder %s1742_s16, %s1742_s16 }
  0x20   : > { %p1745_p2 = pnand %p1743_p1, %p1731_p3  ;;  %p1752_p8 = por %p1751_p4, %p1750_p6 }
  0x22   : > { %p1746_p13 = pneg %p1745_p2 }
  0x24   : > { %p1753_p12 = pnand %p1752_p8, %p1746_p13 }
  0x26   : > { %1756 = shalt.err (!%p1753_p12)
}
  0x27   : > { %1654 = dma.hbm_to_vmem [thread:$0]  (!%p1967_p11), %s2281_s1, 32, %s177_s28, [#allocation6]  }
  0x28   : > { %p2294_p1 = scmp.ne.s32.totalorder %s2293_s7, 0  ;;  %p37_p2 = scmp.eq.s32.totalorder %s1857_s21, 0 }
  0x29   : > { %p2295_p4 = scmp.ne.s32.totalorder %s1853_s20, %s1849_s19  ;;  %p2296_p6 = scmp.eq.s32.totalorder %s1936_s22, 1 }
  0x2a   : > { %s1999_s27 = scalar_select %p2294_p1, %s1853_s20, %s29_s8  }
  0x2b   : > { %p2007_p8 = por %p2296_p6, %p2295_p4  ;;  %p1664_p9 = scmp.lt.s32.totalorder %s1857_s21, 2 }
  0x2c   : > { %s196_s6 = sand.u32 1, %s1853_s20   ;;  %p2298_p12 = pmov %p2295_p4 }
  0x2d   : > { %s1523_s9 = sshll.u32 %s196_s6, 3  ;;  %s1561_s10 = sshll.u32 %s1857_s21, 7 }
  0x2e   : > { %p38_p13 = por %p37_p2, %p2298_p12  ;;  %s2020_s28 = scalar_lea.hbm %s2280_s0, %s1561_s10 }
  0x2f   : > { %s200_s7 = scalar_lea.vmem [#allocation2], %s1523_s9  ;;  %s197_s14 = scalar_lea.sflag [#allocation3], %s196_s6 }
  0x30   : > { %s208_s8 = sshll.u32 %s200_s7, 4  ;;  %p2022_p11 = pnand %p1664_p9, %p38_p13  ;;  %s2026_s8 = int_to_ptr.vmem [resolvable:$true] %s208_s8 }
  0x31   : > { %s1757_s15 = scalar_lea.hbm %s2020_s28, 128  ;;  %s1762_s23 = scalar_lea.hbm %s2280_s0, 256 }
  0x32   : > { %p1758_p0 = scmp.ne.s32.totalorder %s2020_s28, %s1757_s15  ;;  %p1759_p3 = pneg %p2022_p11 }
  0x33   : > { %p1763_p10 = scmp.lt.u32.totalorder %s2020_s28, %s2280_s0  ;;  %p1764_p1 = scmp.lt.u32.totalorder %s1762_s23, %s1757_s15 }
  0x34   : > { %p1760_p5 = pnand %p1759_p3, %p1758_p0  ;;  %p1766_p4 = scmp.lt.u32.totalorder %s1757_s15, %s2020_s28 }
  0x35   : > { %p1765_p2 = por %p1764_p1, %p1763_p10 }
  0x36   : > { %p1761_p7 = pneg %p1760_p5 }
  0x37   : > { %p1767_p6 = por %p1766_p4, %p1765_p2 }
  0x39   : > { %p1768_p9 = pnand %p1767_p6, %p1761_p7 }
  0x3b   : > { %1771 = shalt.err (!%p1768_p9)
}
  0x3c   : > { %s1772_s6 = scalar_lea.vmem %s2026_s8, 128  ;;  %s1860_s11 = smov [#allocation2]  }
  0x3d   : > { %p1773_p12 = scmp.ne.s32.totalorder %s2026_s8, %s1772_s6  ;;  %s1777_s12 = sshll.u32 %s1860_s11, 4  ;;  %s1778_s12 = int_to_ptr.vmem [resolvable:$false] %s1777_s12 }
  0x3e   : > { %s1779_s7 = scalar_lea.vmem %s1778_s12, 256  ;;  %p1780_p5 = scmp.lt.s32.totalorder %s2026_s8, %s1778_s12 }
  0x3f   : > { %p1775_p13 = pnand %p1773_p12, %p1759_p3  ;;  %p1781_p10 = scmp.lt.s32.totalorder %s1779_s7, %s1772_s6 }
  0x41   : > { %p1776_p0 = pneg %p1775_p13  ;;  %p1782_p1 = por %p1781_p10, %p1780_p5 }
  0x43   : > { %p1783_p2 = pnand %p1782_p1, %p1776_p0 }
  0x45   : > { %1786 = shalt.err (!%p1783_p2)
}
  0x46   : > { %1658 = dma.hbm_to_vmem [thread:$0]  (!%p2022_p11), %s2020_s28, 128, %s2026_s8, %s197_s14  }
  0x47   : > { %p2300_p7 = scmp.ne.s32.totalorder %s2291_s26, 0 }
  0x48   : > { %s2056_s15 = sand.u32 (!%p2300_p7), 1, %s1849_s19   ;;  %p2301_p3 = scmp.ne.s32.totalorder (!%p2300_p7), %s2289_s24, 0 }
  0x49   : > { %217 = sbr.rel (%p2300_p7) target bundleno = 1384 (0x568), region = 40  ;;  %s1527_s16 = sshll.u32 (!%p2300_p7), %s2056_s15, 3 }
  0x4a   : > { %s220_s17 = scalar_lea.sflag (!%p2300_p7), [#allocation3], %s2056_s15  ;;  %s223_s23 = scalar_lea.vmem (!%p2300_p7), [#allocation2], %s1527_s16 }
  0x50   : > { %1832 = dma.done.wait (%p2301_p3), %s220_s17, 128  }
  0x51   : > { %1834 = vsyncadd (%p2301_p3), %s220_s17, 4294967168  ;;  %p2302_p4 = scmp.eq.s32.totalorder %s1936_s22, 0 }
  0x53   : > { %1836 = dma.done.wait (%p2302_p4), [#allocation6], 32   ;;  %p2303_p11 = pmov %p2302_p4 }
  0x54   : > { %v261_v0 = vlaneseq  ;;  %v1861_v1 = vmov 1983009808   ;;  %v1862_v6 = vmov 0.0   ;;  %v255_v7 = vld [vmem:[%s223_s23] sm:$0xff]  ;;  %v2072_v8 = vld [vmem:[#allocation5] sm:$0x3] }
  0x55   : > { %1838 = vsyncadd (%p2303_p11), [#allocation6], 4294967264  ;;  %v259_v2 = vunpack.c.l.s4 %v1861_v1  ;;  %1582 = vmatprep.subr.bf16.mxu1 %v1862_v6  ;;  %v268_v10 = vcombine.high %v255_v7, %v255_v7  ;;  %v1863_v11 = vmov 0   ;;  %s1864_s24 = smov 126   ;;  %s1865_s26 = smov 127   ;;  %vm1866_vm0 = vmmov 0  }
  0x56   : > { %v2068_v3 = vshrl.u32 %v261_v0, 7  ;;  %343 = vmatprep.mubr.bf16.mxu0 %v1863_v11  ;;  %1723 = vset.pattern.permute.xlu0 %v1863_v11  ;;  %s1867_s28 = smov 124   ;;  %s1868_s8 = smov 120   ;;  %v2120_v16 = vld [vmem:[%s2282_s2] sm:$0xf]  ;;  %vm293_vm1 = vcmask 1039360  }
  0x57   : > { %v260_v4 = vunpack.c.0.s8 %v259_v2  ;;  %1584 = vmatprep.mubr.msk.bf16.mxu1 %vm1866_vm0, %v1862_v6  ;;  %s1869_s13 = smov 110   ;;  %s1870_s14 = smov 116   ;;  %vm301_vm2 = vcmask 1041408   ;;  %vm297_vm3 = vcmask 31744   ;;  %vm495_vm4 = vcmask 1031168  }
  0x58   : > { %s1871_s9 = smov 109   ;;  %s1872_s10 = smov 112   ;;  %vm605_vm5 = vcmask 900096   ;;  %vm715_vm6 = vcmask 891904   ;;  %vm825_vm7 = vcmask 883712   ;;  %vm935_vm8 = vcmask 752640  }
  0x59   : > { %v263_v5 = vsub.s32 %v260_v4, %v2068_v3  ;;  %s1873_s6 = smov 108   ;;  %s1874_s11 = smov 92   ;;  %vm1045_vm9 = vcmask 744448   ;;  %vm1155_vm10 = vcmask 736256   ;;  %vm1284_vm11 = vcmask 1043456  }
  0x5a   : > { %s1875_s12 = smov 104   ;;  %s1876_s7 = smov 91   ;;  %vm1302_vm12 = vcmask 7168  }
  0x5b   : > { %v2074_v9 = vrot.slane %v255_v7, %v263_v5  ;;  %v264_v12 = vrot.slane %v2072_v8, %v263_v5  ;;  %v2082_v13 = vrot.slane %v268_v10, %v263_v5  ;;  %s1877_s16 = smov 100   ;;  %s1878_s17 = smov 90  }
  0x5c   : > { %s1879_s23 = smov 96  }
  0x5d   : > { %487 = vrot.lane.b32.xlu1 %v2074_v9, %s1864_s24  ;;  %285 = vrot.lane.b32.xlu0 %v2074_v9, %s1865_s26  ;;  %v2090_v14 = vcombine.high %v2074_v9, %v2074_v9  ;;  %v284_v15 = vcombine.high %v2082_v13, %v2082_v13  ;;  %v396_v30 = vsel %vm301_vm2, %v2074_v9, 0  ;;  %v402_v31 = vsel %vm301_vm2, %v2082_v13, 0 }
  0x61   : > { %265 = vrot.lane.b32.xlu0 %v264_v12, %s1867_s28  ;;  %289 = vrot.lane.b32.xlu1 %v2082_v13, %s1865_s26  ;;  %s1884_s28 = smov [#allocation7]  }
  0x65   : > { %287 = vrot.lane.b32.xlu0 %v2090_v14, %s1865_s26  ;;  %291 = vrot.lane.b32.xlu1 %v284_v15, %s1865_s26 }
  0x69   : > { %489 = vrot.lane.b32.xlu0 %v2090_v14, %s1864_s24  ;;  %491 = vrot.lane.b32.xlu1 %v2082_v13, %s1864_s24 }
  0x6d   : > { %493 = vrot.lane.b32.xlu0 %v284_v15, %s1864_s24  ;;  %485 = vrot.lane.b32.xlu1 %v264_v12, %s1868_s8  ;;  %s1425_s24 = scalar_lea.sflag [#allocation4], %s2056_s15  ;;  %s1791_s8 = sshll.u32 %s1884_s28, 4  ;;  %s1792_s8 = int_to_ptr.vmem [resolvable:$false] %s1791_s8 }
  0x71   : > { %597 = vrot.lane.b32.xlu0 %v2074_v9, %s1869_s13  ;;  %599 = vrot.lane.b32.xlu1 %v2090_v14, %s1869_s13 }
  0x75   : > { %601 = vrot.lane.b32.xlu0 %v2082_v13, %s1869_s13  ;;  %603 = vrot.lane.b32.xlu1 %v284_v15, %s1869_s13  ;;  %s1793_s13 = scalar_lea.vmem %s1792_s8, 384 }
  0x79   : > { %595 = vrot.lane.b32.xlu0 %v264_v12, %s1870_s14  ;;  %707 = vrot.lane.b32.xlu1 %v2074_v9, %s1871_s9 }
  0x7d   : > { %709 = vrot.lane.b32.xlu0 %v2090_v14, %s1871_s9  ;;  %711 = vrot.lane.b32.xlu1 %v2082_v13, %s1871_s9 }
  0x81   : > { %713 = vrot.lane.b32.xlu0 %v284_v15, %s1871_s9  ;;  %705 = vrot.lane.b32.xlu1 %v264_v12, %s1872_s10  ;;  %s1880_s10 = smov 1  }
  0x85   : > { %817 = vrot.lane.b32.xlu0 %v2074_v9, %s1873_s6  ;;  %819 = vrot.lane.b32.xlu1 %v2090_v14, %s1873_s6 }
  0x89   : > { %821 = vrot.lane.b32.xlu0 %v2082_v13, %s1873_s6  ;;  %823 = vrot.lane.b32.xlu1 %v284_v15, %s1873_s6 }
  0x8d   : > { %815 = vrot.lane.b32.xlu0 %v264_v12, %s1873_s6  ;;  %927 = vrot.lane.b32.xlu1 %v2074_v9, %s1874_s11  ;;  %s1883_s6 = smov 2  }
  0x91   : > { %929 = vrot.lane.b32.xlu0 %v2090_v14, %s1874_s11  ;;  %931 = vrot.lane.b32.xlu1 %v2082_v13, %s1874_s11 }
  0x95   : > { %933 = vrot.lane.b32.xlu0 %v284_v15, %s1874_s11  ;;  %925 = vrot.lane.b32.xlu1 %v264_v12, %s1875_s12  ;;  %s1641_s11 = smul.u32 12, %s2056_s15 }
  0x97   : > { %s253_s12 = scalar_lea.vmem [#allocation7], %s1641_s11 }
  0x99   : > { %1037 = vrot.lane.b32.xlu0 %v2074_v9, %s1876_s7  ;;  %1039 = vrot.lane.b32.xlu1 %v2090_v14, %s1876_s7 }
  0x9d   : > { %1041 = vrot.lane.b32.xlu0 %v2082_v13, %s1876_s7  ;;  %1043 = vrot.lane.b32.xlu1 %v284_v15, %s1876_s7  ;;  %s1439_s7 = sshll.u32 %s253_s12, 4  ;;  %s2238_s7 = int_to_ptr.vmem [resolvable:$true] %s1439_s7 }
  0x9e   : > { %p1794_p13 = scmp.lt.s32.totalorder %s2238_s7, %s1792_s8 }
  0xa1   : > { %1035 = vrot.lane.b32.xlu0 %v264_v12, %s1877_s16  ;;  %1147 = vrot.lane.b32.xlu1 %v2074_v9, %s1878_s17 }
  0xa5   : > { %1149 = vrot.lane.b32.xlu0 %v2090_v14, %s1878_s17  ;;  %1151 = vrot.lane.b32.xlu1 %v2082_v13, %s1878_s17 }
  0xa9   : > { %1153 = vrot.lane.b32.xlu0 %v284_v15, %s1878_s17  ;;  %1145 = vrot.lane.b32.xlu1 %v264_v12, %s1879_s23 }
  0xad   : > { %1258 = vperm.xlu0 %1723, %v2120_v16  }
  0xcf   : > { %v488_v17 = vpop.permute.xlu1 %487  ;;  %v286_v18 = vpop.permute.xlu0 %285 }
  0xd3   : > { %v266_v19 = vpop.permute.xlu0 %265  ;;  %v290_v20 = vpop.permute.xlu1 %289 }
  0xd7   : > { %v288_v21 = vpop.permute.xlu0 %287  ;;  %v292_v22 = vpop.permute.xlu1 %291 }
  0xd8   : > { %v295_v23 = vsel %vm293_vm1, %v288_v21, %v290_v20  ;;  %v294_v24 = vsel %vm293_vm1, %v286_v18, %v288_v21  ;;  %v296_v25 = vsel %vm293_vm1, %v290_v20, %v292_v22 }
  0xd9   : > { %1529 = vmatprep.subr.msk.bf16.mxu0 %vm301_vm2, %v295_v23  ;;  %v303_v26 = vsel %vm301_vm2, %v294_v24, 0  ;;  %v309_v27 = vsel %vm301_vm2, %v296_v25, 0 }
  0xda   : > { %312 = vmatpush1.bf16.msra.mxu0 %v303_v26  ;;  %1583 = vmatpush3.bf16.msra.mxu1 %v309_v27 }
  0xdb   : > { %v490_v28 = vpop.permute.xlu0 %489  ;;  %v492_v29 = vpop.permute.xlu1 %491  ;;  %1532 = vmatprep.subr.msk.bf16.mxu0 %vm301_vm2, %v2090_v14  ;;  %1588 = vmatprep.subr.bf16.mxu1 %v1862_v6 }
  0xdc   : > { %v497_v32 = vsel %vm495_vm4, %v490_v28, %v492_v29  ;;  %v496_v35 = vsel %vm495_vm4, %v488_v17, %v490_v28 }
  0xdd   : > { %1530 = vmatmul.mubr.msk.bf16.vlgmr.msra.gmra.mrb[0].mxu0 %vm297_vm3, %v266_v19  ;;  %1585 = vmatmul.mubr.msk.bf16.vlgmr.msra.gmra.mrb[0].mxu1 %vm297_vm3, %v266_v19  ;;  %v503_v39 = vsel %vm301_vm2, %v496_v35, 0 }
  0xde   : > { %405 = vmatpush1.bf16.msra.mxu0 %v396_v30  ;;  %1589 = vmatpush3.bf16.msra.mxu1 %v402_v31 }
  0xdf   : > { %v494_v33 = vpop.permute.xlu0 %493  ;;  %1535 = vmatprep.subr.msk.bf16.mxu0 %vm301_vm2, %v497_v32  ;;  %v486_v34 = vpop.permute.xlu1 %485  ;;  %436 = vmatprep.mubr.bf16.mxu0 %v1863_v11 }
  0xe0   : > { %1590 = vmatprep.mubr.msk.bf16.mxu1 %vm1866_vm0, %v1862_v6  ;;  %1594 = vmatprep.subr.bf16.mxu1 %v1862_v6  ;;  %v498_v36 = vsel %vm495_vm4, %v492_v29, %v494_v33 }
  0xe1   : > { %v509_v40 = vsel %vm301_vm2, %v498_v36, 0 }
  0xe3   : > { %v598_v37 = vpop.permute.xlu0 %597  ;;  %v600_v38 = vpop.permute.xlu1 %599 }
  0xe4   : > { %v606_v44 = vsel %vm605_vm5, %v598_v37, %v600_v38 }
  0xe5   : > { %1533 = vmatmul.mubr.msk.bf16.vlgmr.msra.gmra.mrb[4].mxu0 %vm297_vm3, %v2072_v8  ;;  %1591 = vmatmul.mubr.msk.bf16.vlgmr.msra.gmra.mrb[4].mxu1 %vm297_vm3, %v2072_v8  ;;  %v613_v48 = vsel %vm301_vm2, %v606_v44, 0 }
  0xe6   : > { %512 = vmatpush1.bf16.msra.mxu0 %v503_v39  ;;  %1595 = vmatpush3.bf16.msra.mxu1 %v509_v40 }
  0xe7   : > { %v602_v41 = vpop.permute.xlu0 %601  ;;  %v604_v42 = vpop.permute.xlu1 %603  ;;  %543 = vmatprep.mubr.bf16.mxu0 %v1863_v11  ;;  %1596 = vmatprep.mubr.msk.bf16.mxu1 %vm1866_vm0, %v1862_v6 }
  0xe8   : > { %v607_v43 = vsel %vm605_vm5, %v600_v38, %v602_v41  ;;  %1600 = vmatprep.subr.bf16.mxu1 %v1862_v6  ;;  %v608_v45 = vsel %vm605_vm5, %v602_v41, %v604_v42 }
  0xe9   : > { %1538 = vmatprep.subr.msk.bf16.mxu0 %vm301_vm2, %v607_v43  ;;  %v619_v49 = vsel %vm301_vm2, %v608_v45, 0 }
  0xeb   : > { %v596_v46 = vpop.permute.xlu0 %595  ;;  %v708_v47 = vpop.permute.xlu1 %707 }
  0xed   : > { %1536 = vmatmul.mubr.msk.bf16.vlgmr.msra.gmra.mrb[8].mxu0 %vm297_vm3, %v486_v34  ;;  %1597 = vmatmul.mubr.msk.bf16.vlgmr.msra.gmra.mrb[8].mxu1 %vm297_vm3, %v486_v34 }
  0xee   : > { %622 = vmatpush1.bf16.msra.mxu0 %v613_v48  ;;  %1601 = vmatpush3.bf16.msra.mxu1 %v619_v49 }
  0xef   : > { %v710_v50 = vpop.permute.xlu0 %709  ;;  %v712_v51 = vpop.permute.xlu1 %711  ;;  %653 = vmatprep.mubr.bf16.mxu0 %v1863_v11  ;;  %1602 = vmatprep.mubr.msk.bf16.mxu1 %vm1866_vm0, %v1862_v6 }
  0xf0   : > { %v717_v52 = vsel %vm715_vm6, %v710_v50, %v712_v51  ;;  %1606 = vmatprep.subr.bf16.mxu1 %v1862_v6  ;;  %v716_v53 = vsel %vm715_vm6, %v708_v47, %v710_v50 }
  0xf1   : > { %1541 = vmatprep.subr.msk.bf16.mxu0 %vm301_vm2, %v717_v52  ;;  %v723_v57 = vsel %vm301_vm2, %v716_v53, 0 }
  0xf3   : > { %v714_v54 = vpop.permute.xlu0 %713  ;;  %v706_v55 = vpop.permute.xlu1 %705 }
  0xf4   : > { %v718_v56 = vsel %vm715_vm6, %v712_v51, %v714_v54 }
  0xf5   : > { %v729_v58 = vsel %vm301_vm2, %v718_v56, 0  ;;  %1539 = vmatmul.mubr.msk.bf16.vlgmr.msra.gmra.mrb[12].mxu0 %vm297_vm3, %v596_v46  ;;  %1603 = vmatmul.mubr.msk.bf16.vlgmr.msra.gmra.mrb[12].mxu1 %vm297_vm3, %v596_v46 }
  0xf6   : > { %732 = vmatpush1.bf16.msra.mxu0 %v723_v57  ;;  %1607 = vmatpush3.bf16.msra.mxu1 %v729_v58 }
  0xf7   : > { %v818_v59 = vpop.permute.xlu0 %817  ;;  %v820_v60 = vpop.permute.xlu1 %819  ;;  %763 = vmatprep.mubr.bf16.mxu0 %v1863_v11  ;;  %1608 = vmatprep.mubr.msk.bf16.mxu1 %vm1866_vm0, %v1862_v6 }
  0xf8   : > { %1612 = vmatprep.subr.bf16.mxu1 %v1862_v6  ;;  %v826_v61 = vsel %vm825_vm7, %v818_v59, %v820_v60 }
  0xf9   : > { %v833_v4 = vsel %vm301_vm2, %v826_v61, 0 }
  0xfb   : > { %v822_v62 = vpop.permute.xlu0 %821  ;;  %v824_v63 = vpop.permute.xlu1 %823 }
  0xfc   : > { %v827_v0 = vsel %vm825_vm7, %v820_v60, %v822_v62  ;;  %v828_v1 = vsel %vm825_vm7, %v822_v62, %v824_v63 }
  0xfd   : > { %v839_v2 = vsel %vm301_vm2, %v828_v1, 0  ;;  %1542 = vmatmul.mubr.msk.bf16.vlgmr.msra.gmra.mrb[16].mxu0 %vm297_vm3, %v706_v55  ;;  %1609 = vmatmul.mubr.msk.bf16.vlgmr.msra.gmra.mrb[16].mxu1 %vm297_vm3, %v706_v55 }
  0xfe   : > { %1544 = vmatprep.subr.msk.bf16.mxu0 %vm301_vm2, %v827_v0  ;;  %1613 = vmatpush3.bf16.msra.mxu1 %v839_v2 }
  0xff   : > { %842 = vmatpush1.bf16.msra.mxu0 %v833_v4  ;;  %v816_v5 = vpop.permute.xlu0 %815  ;;  %v928_v7 = vpop.permute.xlu1 %927  ;;  %873 = vmatprep.mubr.bf16.mxu0 %v1863_v11 }
 0x100   : > { %1614 = vmatprep.mubr.msk.bf16.mxu1 %vm1866_vm0, %v1862_v6  ;;  %1618 = vmatprep.subr.bf16.mxu1 %v1862_v6 }
 0x103   : > { %v930_v8 = vpop.permute.xlu0 %929  ;;  %v932_v9 = vpop.permute.xlu1 %931 }
 0x104   : > { %v936_v10 = vsel %vm935_vm8, %v928_v7, %v930_v8  ;;  %v937_v12 = vsel %vm935_vm8, %v930_v8, %v932_v9 }
 0x105   : > { %v943_v13 = vsel %vm301_vm2, %v936_v10, 0  ;;  %1545 = vmatmul.mubr.msk.bf16.vlgmr.msra.gmra.mrb[20].mxu0 %vm297_vm3, %v816_v5  ;;  %1615 = vmatmul.mubr.msk.bf16.vlgmr.msra.gmra.mrb[20].mxu1 %vm297_vm3, %v816_v5 }
 0x106   : > { %1547 = vmatprep.subr.msk.bf16.mxu0 %vm301_vm2, %v937_v12  ;;  %983 = vmatprep.mubr.bf16.mxu0 %v1863_v11 }
 0x107   : > { %952 = vmatpush1.bf16.msra.mxu0 %v943_v13  ;;  %v934_v14 = vpop.permute.xlu0 %933  ;;  %v926_v15 = vpop.permute.xlu1 %925  ;;  %1620 = vmatprep.mubr.msk.bf16.mxu1 %vm1866_vm0, %v1862_v6 }
 0x108   : > { %v938_v17 = vsel %vm935_vm8, %v932_v9, %v934_v14 }
 0x109   : > { %v949_v18 = vsel %vm301_vm2, %v938_v17, 0 }
 0x10a   : > { %1619 = vmatpush3.bf16.msra.mxu1 %v949_v18 }
 0x10b   : > { %v1038_v19 = vpop.permute.xlu0 %1037  ;;  %v1040_v20 = vpop.permute.xlu1 %1039  ;;  %1624 = vmatprep.subr.bf16.mxu1 %v1862_v6 }
 0x10c   : > { %v1046_v21 = vsel %vm1045_vm9, %v1038_v19, %v1040_v20 }
 0x10d   : > { %1548 = vmatmul.mubr.msk.bf16.vlgmr.msra.gmra.mrb[24].mxu0 %vm297_vm3, %v926_v15  ;;  %1621 = vmatmul.mubr.msk.bf16.vlgmr.msra.gmra.mrb[24].mxu1 %vm297_vm3, %v926_v15  ;;  %v1053_v26 = vsel %vm301_vm2, %v1046_v21, 0 }
 0x10e   : > { %1093 = vmatprep.mubr.bf16.mxu0 %v1863_v11  ;;  %1626 = vmatprep.mubr.msk.bf16.mxu1 %vm1866_vm0, %v1862_v6 }
 0x10f   : > { %v1042_v22 = vpop.permute.xlu0 %1041  ;;  %v1044_v23 = vpop.permute.xlu1 %1043 }
 0x110   : > { %v1047_v24 = vsel %vm1045_vm9, %v1040_v20, %v1042_v22  ;;  %v1048_v25 = vsel %vm1045_vm9, %v1042_v22, %v1044_v23 }
 0x111   : > { %v1059_v27 = vsel %vm301_vm2, %v1048_v25, 0  ;;  %1550 = vmatprep.subr.msk.bf16.mxu0 %vm301_vm2, %v1047_v24 }
 0x112   : > { %1062 = vmatpush1.bf16.msra.mxu0 %v1053_v26  ;;  %1625 = vmatpush3.bf16.msra.mxu1 %v1059_v27 }
 0x113   : > { %v1036_v28 = vpop.permute.xlu0 %1035  ;;  %v1148_v29 = vpop.permute.xlu1 %1147  ;;  %1630 = vmatprep.subr.bf16.mxu1 %v1862_v6 }
 0x115   : > { %1551 = vmatmul.mubr.msk.bf16.vlgmr.msra.gmra.mrb[28].mxu0 %vm297_vm3, %v1036_v28  ;;  %1627 = vmatmul.mubr.msk.bf16.vlgmr.msra.gmra.mrb[28].mxu1 %vm297_vm3, %v1036_v28 }
 0x116   : > { %1203 = vmatprep.mubr.bf16.mxu0 %v1863_v11  ;;  %1632 = vmatprep.mubr.msk.bf16.mxu1 %vm1866_vm0, %v1862_v6 }
 0x117   : > { %v1150_v30 = vpop.permute.xlu0 %1149  ;;  %v1152_v31 = vpop.permute.xlu1 %1151 }
 0x118   : > { %v1156_v32 = vsel %vm1155_vm10, %v1148_v29, %v1150_v30  ;;  %v1157_v33 = vsel %vm1155_vm10, %v1150_v30, %v1152_v31 }
 0x119   : > { %v1163_v34 = vsel %vm301_vm2, %v1156_v32, 0  ;;  %1553 = vmatprep.subr.msk.bf16.mxu0 %vm301_vm2, %v1157_v33 }
 0x11a   : > { %1172 = vmatpush1.bf16.msra.mxu0 %v1163_v34 }
 0x11b   : > { %v1154_v35 = vpop.permute.xlu0 %1153  ;;  %v1146_v36 = vpop.permute.xlu1 %1145  ;;  %1636 = vmatprep.subr.mxu0 %v1862_v6 }
 0x11c   : > { %v1158_v37 = vsel %vm1155_vm10, %v1152_v31, %v1154_v35 }
 0x11d   : > { %v1169_v38 = vsel %vm301_vm2, %v1158_v37, 0  ;;  %1554 = vmatmul.mubr.msk.bf16.vlgmr.msra.gmra.mrb[32].mxu0 %vm297_vm3, %v1146_v36 }
 0x11e   : > { %1631 = vmatpush3.bf16.msra.mxu1 %v1169_v38  ;;  %1638 = vmatprep.mubr.msk.f32.mxu0 %vm1866_vm0, %v1862_v6 }
 0x121   : > { %1633 = vmatmul.mubr.msk.bf16.vlgmr.msra.gmra.mrb[32].mxu1 %vm297_vm3, %v1146_v36 }
 0x1b0   : > { %v345_v11 = vpop.f32.mrb[0].mxu0  ;;  %v386_v39 = vpop.f32.mrb[0].mxu1 }
 0x1b1   : > { %v347_v40 = vpop.f32.mrb[1].mxu0  ;;  %v1586_v41 = vpop.f32.mrb[1].mxu1 }
 0x1b2   : > { %v349_v42 = vpop.f32.mrb[2].mxu0  ;;  %v389_v43 = vpop.f32.mrb[2].mxu1 }
 0x1b3   : > { %v350_v44 = vpop.f32.mrb[3].mxu0  ;;  %v1587_v45 = vpop.f32.mrb[3].mxu1 }
 0x1b8   : > { %v438_v46 = vpop.f32.mrb[4].mxu0  ;;  %v479_v47 = vpop.f32.mrb[4].mxu1 }
 0x1b9   : > { %v439_v48 = vadd.f32 %v438_v46, %v345_v11  ;;  %v480_v49 = vadd.f32 %v479_v47, %v386_v39  ;;  %v440_v50 = vpop.f32.mrb[5].mxu0  ;;  %v1592_v51 = vpop.f32.mrb[5].mxu1 }
 0x1ba   : > { %v441_v52 = vadd.f32 %v440_v50, %v347_v40  ;;  %v442_v53 = vpop.f32.mrb[6].mxu0  ;;  %v482_v54 = vpop.f32.mrb[6].mxu1 }
 0x1bb   : > { %v443_v6 = vpop.f32.mrb[7].mxu0  ;;  %v1593_v55 = vpop.f32.mrb[7].mxu1 }
 0x1c0   : > { %v545_v56 = vpop.f32.mrb[8].mxu0  ;;  %v586_v57 = vpop.f32.mrb[8].mxu1 }
 0x1c1   : > { %v592_v58 = vadd.f32 %v545_v56, %v439_v48  ;;  %v594_v59 = vadd.f32 %v586_v57, %v480_v49  ;;  %v547_v60 = vpop.f32.mrb[9].mxu0  ;;  %v1598_v61 = vpop.f32.mrb[9].mxu1 }
 0x1c2   : > { %v593_v62 = vadd.f32 %v547_v60, %v441_v52  ;;  %v549_v63 = vpop.f32.mrb[10].mxu0  ;;  %v589_v0 = vpop.f32.mrb[10].mxu1  ;;  %v1268_v60 = vsub.s32 0, %v2068_v3  ;;  %v1264_v61 = vld [vmem:[%s2284_s4] sm:$0x7] }
 0x1c3   : > { %v550_v1 = vpop.f32.mrb[11].mxu0  ;;  %v1599_v2 = vpop.f32.mrb[11].mxu1 }
 0x1c4   : > { %v1259_v0 = vpop.permute.xlu0 %1258 }
 0x1c8   : > { %v655_v4 = vpop.f32.mrb[12].mxu0  ;;  %v696_v5 = vpop.f32.mrb[12].mxu1 }
 0x1c9   : > { %v702_v7 = vadd.f32 %v655_v4, %v592_v58  ;;  %v704_v8 = vadd.f32 %v696_v5, %v594_v59  ;;  %v657_v9 = vpop.f32.mrb[13].mxu0  ;;  %v1604_v10 = vpop.f32.mrb[13].mxu1  ;;  %v1269_v4 = vrot.slane %v1264_v61, %v1268_v60  ;;  %v1276_v5 = vsub.s32 2, %v2068_v3 }
 0x1ca   : > { %v703_v12 = vadd.f32 %v657_v9, %v593_v62  ;;  %v659_v13 = vpop.f32.mrb[14].mxu0  ;;  %v699_v14 = vpop.f32.mrb[14].mxu1  ;;  %v1272_v62 = vsub.s32 1, %v2068_v3 }
 0x1cb   : > { %v660_v15 = vpop.f32.mrb[15].mxu0  ;;  %v1605_v17 = vpop.f32.mrb[15].mxu1 }
 0x1cc   : > { %v1273_v9 = vrot.slane %v1264_v61, %v1272_v62 }
 0x1d0   : > { %v765_v18 = vpop.f32.mrb[16].mxu0  ;;  %v806_v19 = vpop.f32.mrb[16].mxu1 }
 0x1d1   : > { %v812_v20 = vadd.f32 %v765_v18, %v702_v7  ;;  %v814_v21 = vadd.f32 %v806_v19, %v704_v8  ;;  %v767_v22 = vpop.f32.mrb[17].mxu0  ;;  %v1610_v23 = vpop.f32.mrb[17].mxu1  ;;  %v1277_v18 = vrot.slane %v1264_v61, %v1276_v5 }
 0x1d2   : > { %v813_v24 = vadd.f32 %v767_v22, %v703_v12  ;;  %v769_v25 = vpop.f32.mrb[18].mxu0  ;;  %v809_v26 = vpop.f32.mrb[18].mxu1 }
 0x1d3   : > { %v770_v27 = vpop.f32.mrb[19].mxu0  ;;  %v1611_v28 = vpop.f32.mrb[19].mxu1 }
 0x1d8   : > { %v875_v29 = vpop.f32.mrb[20].mxu0  ;;  %v916_v30 = vpop.f32.mrb[20].mxu1 }
 0x1d9   : > { %v922_v31 = vadd.f32 %v875_v29, %v812_v20  ;;  %v924_v32 = vadd.f32 %v916_v30, %v814_v21  ;;  %v877_v33 = vpop.f32.mrb[21].mxu0  ;;  %v1616_v34 = vpop.f32.mrb[21].mxu1 }
 0x1da   : > { %v923_v35 = vadd.f32 %v877_v33, %v813_v24  ;;  %v879_v36 = vpop.f32.mrb[22].mxu0  ;;  %v919_v37 = vpop.f32.mrb[22].mxu1 }
 0x1db   : > { %v880_v38 = vpop.f32.mrb[23].mxu0  ;;  %v1617_v11 = vpop.f32.mrb[23].mxu1 }
 0x1dc   : > { %v1304_v11 = vld [vmem:[%s2283_s3] sm:$0xf] }
 0x1e0   : > { %v985_v39 = vpop.f32.mrb[24].mxu0  ;;  %v1026_v40 = vpop.f32.mrb[24].mxu1 }
 0x1e1   : > { %v1032_v41 = vadd.f32 %v985_v39, %v922_v31  ;;  %v1034_v42 = vadd.f32 %v1026_v40, %v924_v32  ;;  %v987_v43 = vpop.f32.mrb[25].mxu0  ;;  %v1622_v44 = vpop.f32.mrb[25].mxu1 }
 0x1e2   : > { %v1033_v45 = vadd.f32 %v987_v43, %v923_v35  ;;  %v989_v46 = vpop.f32.mrb[26].mxu0  ;;  %v1029_v47 = vpop.f32.mrb[26].mxu1 }
 0x1e3   : > { %v990_v48 = vpop.f32.mrb[27].mxu0  ;;  %v1623_v49 = vpop.f32.mrb[27].mxu1  ;;  %v1881_v46 = vmov 1  }
 0x1e4   : > { %1724 = vset.pattern.permute.xlu1 %v1881_v46  ;;  %v1882_v49 = vmov 2  }
 0x1e5   : > { %1725 = vset.pattern.permute.xlu0 %v1882_v49 }
 0x1e8   : > { %v1095_v50 = vpop.f32.mrb[28].mxu0  ;;  %v1136_v51 = vpop.f32.mrb[28].mxu1 }
 0x1e9   : > { %v1142_v52 = vadd.f32 %v1095_v50, %v1032_v41  ;;  %v1144_v53 = vadd.f32 %v1136_v51, %v1034_v42  ;;  %v1097_v54 = vpop.f32.mrb[29].mxu0  ;;  %v1628_v6 = vpop.f32.mrb[29].mxu1 }
 0x1ea   : > { %v1143_v55 = vadd.f32 %v1097_v54, %v1033_v45  ;;  %v1099_v56 = vpop.f32.mrb[30].mxu0  ;;  %v1139_v57 = vpop.f32.mrb[30].mxu1 }
 0x1eb   : > { %v1100_v58 = vpop.f32.mrb[31].mxu0  ;;  %v1629_v59 = vpop.f32.mrb[31].mxu1 }
 0x1f0   : > { %v1205_v63 = vpop.f32.mrb[32].mxu0 }
 0x1f1   : > { %v1252_v1 = vadd.f32 %v1205_v63, %v1142_v52  ;;  %v1207_v2 = vpop.f32.mrb[33].mxu0 }
 0x1f2   : > { %v1253_v7 = vadd.f32 %v1207_v2, %v1143_v55  ;;  %v1209_v8 = vpop.f32.mrb[34].mxu0 }
 0x1f3   : > { %v1261_v10 = vadd.f32 %v1259_v0, %v1252_v1  ;;  %v1210_v12 = vpop.f32.mrb[35].mxu0 }
 0x1f4   : > { %v1262_v13 = vadd.f32 %v1259_v0, %v1253_v7  ;;  %v1246_v14 = vpop.f32.mrb[32].mxu1 }
 0x1f5   : > { %v1254_v15 = vadd.f32 %v1246_v14, %v1144_v53  ;;  %v1634_v17 = vpop.f32.mrb[33].mxu1  ;;  %v1281_v19 = vmul.f32 %v1269_v4, %v1261_v10 }
 0x1f6   : > { %v1249_v20 = vpop.f32.mrb[34].mxu1  ;;  %v1282_v21 = vmul.f32 %v1273_v9, %v1262_v13 }
 0x1f7   : > { %v1263_v22 = vadd.f32 %v1259_v0, %v1254_v15  ;;  %v1635_v23 = vpop.f32.mrb[35].mxu1  ;;  %v1285_v24 = vsel %vm1284_vm11, %v1281_v19, 0.0  ;;  %v1292_v25 = vmul.f32 %v1281_v19, %v1261_v10 }
 0x1f8   : > { %v1286_v3 = vsel %vm1284_vm11, %v1282_v21, 0.0  ;;  %v1293_v26 = vmul.f32 %v1282_v21, %v1262_v13 }
 0x1f9   : > { %v1283_v27 = vmul.f32 %v1277_v18, %v1263_v22  ;;  %v1287_v28 = vadd.f32 %v1286_v3, %v1285_v24  ;;  %v1295_v29 = vsel %vm1284_vm11, %v1292_v25, 0.0 }
 0x1fa   : > { %v1296_v30 = vsel %vm1284_vm11, %v1293_v26, 0.0 }
 0x1fb   : > { %v1288_v31 = vsel %vm1284_vm11, %v1283_v27, 0.0  ;;  %v1294_v32 = vmul.f32 %v1283_v27, %v1263_v22  ;;  %v1297_v33 = vadd.f32 %v1296_v30, %v1295_v29 }
 0x1fc   : > { %v1289_v34 = vadd.f32 %v1288_v31, %v1287_v28 }
 0x1fd   : > { %v1298_v35 = vsel %vm1284_vm11, %v1294_v32, 0.0 }
 0x1fe   : > { %1290 = vadd.xlane.f32.xlu1 %v1289_v34  ;;  %v1299_v36 = vadd.f32 %v1298_v35, %v1297_v33 }
 0x200   : > { %1300 = vadd.xlane.f32.xlu0 %v1299_v36 }
 0x28b   : > { %v1291_v37 = vpop.xlane.xlu1 %1290 }
 0x28d   : > { %v1301_v38 = vpop.xlane.xlu0 %1300 }
 0x28e   : > { %v1303_v39 = vsel %vm1302_vm12, %v1291_v37, %v1301_v38 }
 0x28f   : > { %1637 = vmatpush3.msk.msra.mxu0 %vm1284_vm11, %v1303_v39 }
 0x290   : > { %1639 = vmatmul.mubr.msk.f32.vlgmr.msra.gmra.mrb[36].mxu0 %vm297_vm3, %v1304_v11 }
 0x363   : > { %v1377_v40 = vpop.f32.mrb[36].mxu0 }
 0x364   : > { %v1381_v41 = vmul.f32 %v1377_v40, %v1377_v40  ;;  %v1640_v42 = vpop.f32.mrb[37].mxu0 }
 0x366   : > { %1383 = vrot.lane.b32.xlu1 %v1381_v41, %s1880_s10 }
 0x3d8   : > { %v1384_v43 = vpop.permute.xlu1 %1383 }
 0x3d9   : > { %v1386_v44 = vsub.f32 %v1377_v40, %v1384_v43 }
 0x3db   : > { %v1387_v45 = vadd.f32 1e-05, %v1386_v44 }
 0x3dd   : > { %1727 = vrsqrt.f32 %v1387_v45 }
 0x3e7   : > { %v1728_v47 = vpop.eup %1727 }
 0x3e8   : > { %v1389_v48 = vmul.f32 %v1728_v47, %v2120_v16 }
 0x3ea   : > { %1391 = vrot.lane.b32.xlu0 %v1389_v48, %s1865_s26  ;;  %s1642_s26 = smul.u32 192, %s1936_s22  ;;  %s1787_s22 = scalar_lea.vmem %s2238_s7, 192 }
 0x3eb   : > { %p1788_p6 = scmp.ne.s32.totalorder %s2238_s7, %s1787_s22  ;;  %p1795_p0 = scmp.lt.s32.totalorder %s1793_s13, %s1787_s22 }
 0x3ec   : > { %s2236_s23 = scalar_lea.hbm %s2285_s5, %s1642_s26 }
 0x3ed   : > { %p1789_p9 = pnand %p1788_p6, %p2007_p8  ;;  %p1796_p5 = por %p1795_p0, %p1794_p13 }
 0x3ef   : > { %p1790_p12 = pneg %p1789_p9 }
 0x3f1   : > { %p1797_p10 = pnand %p1796_p5, %p1790_p12 }
 0x45c   : > { %v1392_v50 = vpop.permute.xlu0 %1391 }
 0x45d   : > { %v1394_v51 = vmul.f32 %v1392_v50, %v1377_v40 }
 0x45f   : > { %1396 = vrot.lane.b32.xlu1 %v1394_v51, %s1883_s6 }
 0x463   : > { %1401 = vperm.xlu1 %1724, %v1389_v48  }
 0x4d1   : > { %v1397_v52 = vpop.permute.xlu1 %1396 }
 0x4d2   : > { %v1399_v53 = vsub.f32 %v2120_v16, %v1397_v52 }
 0x4d4   : > { %1409 = vperm.xlu0 %1725, %v1399_v53  }
 0x4e2   : > { %v1402_v54 = vpop.permute.xlu1 %1401 }
 0x4e3   : > { %v1404_v6 = vmul.f32 %v1402_v54, %v1261_v10  ;;  %v1405_v55 = vmul.f32 %v1402_v54, %v1262_v13  ;;  %v1406_v56 = vmul.f32 %v1402_v54, %v1263_v22 }
 0x553   : > { %v1410_v57 = vpop.permute.xlu0 %1409 }
 0x554   : > { %v1412_v58 = vadd.f32 %v1410_v57, %v1404_v6  ;;  %v1413_v59 = vadd.f32 %v1410_v57, %v1405_v55  ;;  %v1414_v60 = vadd.f32 %v1410_v57, %v1406_v56 }
 0x556   : > { %v1415_v61 = vmax.f32 %v1412_v58, 0.0  ;;  %v1416_v62 = vmax.f32 %v1413_v59, 0.0  ;;  %v1417_v63 = vmax.f32 %v1414_v60, 0.0 }
 0x558   : > { %v1420_v0 = vcombine.low %v1415_v61, %v1416_v62  ;;  %1423 = vst [vmem:[%s253_s12 + $0x8] sm:$0xf] %v1417_v63 }
 0x55a   : > { %1422 = vst [vmem:[%s253_s12] sm:$0xff] %v1420_v0 }
 0x55b   : > { %1800 = shalt.err (!%p1797_p10)
}
 0x55c   : > { %s1801_s15 = scalar_lea.hbm %s2236_s23, 192  ;;  %s1805_s10 = scalar_lea.hbm %s2285_s5, 384 }
 0x55d   : > { %p1802_p1 = scmp.ne.s32.totalorder %s2236_s23, %s1801_s15  ;;  %p1806_p3 = scmp.lt.u32.totalorder %s2236_s23, %s2285_s5 }
 0x55e   : > { %p1807_p4 = scmp.lt.u32.totalorder %s1805_s10, %s1801_s15  ;;  %p1809_p6 = scmp.lt.u32.totalorder %s1801_s15, %s2236_s23 }
 0x55f   : > { %p1803_p2 = pnand %p1802_p1, %p2007_p8 }
 0x560   : > { %p1808_p11 = por %p1807_p4, %p1806_p3 }
 0x561   : > { %p1804_p7 = pneg %p1803_p2 }
 0x562   : > { %p1810_p9 = por %p1809_p6, %p1808_p11 }
 0x564   : > { %p1811_p12 = pnand %p1810_p9, %p1804_p7 }
 0x566   : > { %1814 = shalt.err (!%p1811_p12)
}
 0x567   : > { %1649 = dma.vmem_to_hbm [thread:$0]  (%p2007_p8), %s2238_s7, 192, %s2236_s23, %s1425_s24  }
 0x568 PF: > { %s1451_s26 = sand.u32 1, %s1845_s18   ;;  %p2304_p13 = scmp.ne.s32.totalorder %s2290_s25, 0 }
 0x569   : > { %p2305_p0 = scmp.ge.s32.totalorder %s1857_s21, 2  ;;  %s1452_s12 = scalar_lea.sflag [#allocation4], %s1451_s26 }
 0x56b   : > { %p1660_p5 = pnand %p2305_p0, %p2304_p13 }
 0x56d   : > { %1840 = dma.done.wait (!%p1660_p5), %s1452_s12, 192  }
 0x56e   : > { %1842 = vsyncadd (!%p1660_p5), %s1452_s12, 4294967104  ;;  %p19_p10 = scmp.ge.s32.totalorder %s1963_s29, 4   ;;  %s2306_s18 = smov %s1849_s19 }
 0x56f   : > { %s2307_s19 = smov %s1853_s20  ;;  %s2308_s20 = smov %s1999_s27 }
 0x570   : > { %s2309_s21 = smov %s1963_s29  ;;  %21 = sbr.rel (!%p19_p10) target bundleno = 6 (0x6), region = 89 }
 0x577   :  { %1457 = vsyncpa [#allocation3], 1 }
 0x578   :  { %1459 = vsyncpa [#allocation3 + $0x1], 1 }
 0x579   :  { %1460 = vsyncpa [#allocation6], 1 }
 0x57a   :  { %1461 = vsyncpa [#allocation4], 1 }
 0x57b   :  { %1463 = vsyncpa [#allocation4 + $0x1], 1 }

</bundles_post_ra>
